<compile_context>
chip_gen: v7x
topology: tpu7x:2x2x1
jax: 0.10.0
libtpu: 0.0.40
codegen_flags: <defaults>
</compile_context>

<pallas_src>
import jax
import jax.numpy as jnp
from jax.experimental import pallas as pl
from jax.experimental.pallas import tpu as pltpu

EPS = 1e-5


def decoder_kernel(x_ref,
                   w1_ref, g1_ref, beta1_ref,
                   w2_ref, g2_ref, beta2_ref,
                   w3_ref, b3_ref,
                   o_ref,
                   h2_ref):
    """One grid step: rebuild the cached h2 on the first inner step (per core),
    then one output-column-tile GEMM against w3."""

    @pl.when(pl.program_id(1) == 0)
    def _compute_h2():
        def linear_bn_relu(h_in_bf16, w_ref, g_ref, beta_ref):
            # bf16 operands -> MXU, f32 accumulation.  Linear bias omitted
            # (cancelled exactly by BN's mean subtraction).
            h = jnp.dot(h_in_bf16, w_ref[...], preferred_element_type=jnp.float32)
            # PyTorch BN training mode: per-feature batch mean, biased variance
            # (two-pass form: safe against cancellation when |mean| >> std).
            mu = jnp.mean(h, axis=0, keepdims=True)
            var = jnp.mean((h - mu) ** 2, axis=0, keepdims=True)
            scale = jax.lax.rsqrt(var + EPS) * g_ref[...]   # folded affine scale
            return jnp.maximum((h - mu) * scale + beta_ref[...], 0.0)

        h1 = linear_bn_relu(x_ref[...], w1_ref, g1_ref, beta1_ref)
        h2 = linear_bn_relu(h1.astype(jnp.bfloat16), w2_ref, g2_ref, beta2_ref)
        h2_ref[...] = h2.astype(jnp.bfloat16)

    # Final linear on the current output-column tile, reading the cached h2.
    out = jnp.dot(h2_ref[...], w3_ref[...],
                  preferred_element_type=jnp.float32) + b3_ref[...]
    o_ref[...] = out.astype(o_ref.dtype)


def _round_up(n, m=128):
    return ((n + m - 1) // m) * m


def prepare_params(params):
    """One-time padding / bf16 casting of the decoder parameters.

    Feature dims are zero-padded to multiples of 128 so every intermediate and
    the output store are lane-dense.  Padding is exactly neutral: padded
    columns stay zero through linear (zero weight cols, no bias), BN (gamma
    pad = 0, beta pad = 0) and ReLU; the wrapper slices them off.

    Returns (prepared_arrays, out_dim)."""
    (w1, b1, g1, be1, w2, b2, g2, be2, w3, b3) = params
    del b1, b2  # exactly cancelled by BatchNorm's mean subtraction

    L = w1.shape[0]
    H, H2, OUT = w1.shape[1], w2.shape[1], w3.shape[1]
    HP, H2P, OP = _round_up(H), _round_up(H2), _round_up(OUT)

    def pad2(a, rows, cols):
        return jnp.pad(a, ((0, rows - a.shape[0]), (0, cols - a.shape[1])))

    prep = (
        pad2(w1, L, HP).astype(jnp.bfloat16),
        pad2(g1, 1, HP), pad2(be1, 1, HP),
        pad2(w2, HP, H2P).astype(jnp.bfloat16),
        pad2(g2, 1, H2P), pad2(be2, 1, H2P),
        pad2(w3, H2P, OP).astype(jnp.bfloat16),
        pad2(b3, 1, OP),
    )
    return prep, OUT


def decoder_forward(x, prep, out_dim, *, tn=512):
    """x: (B, latent) f32; prep from prepare_params(); returns (B, out_dim) f32."""
    (w1p, g1p, be1p, w2p, g2p, be2p, w3p, b3p) = prep
    B = x.shape[0]
    H2P, OP = w3p.shape

    # Output-column tile width: as large as possible (fewer grid steps, better
    # DMA / MXU feed), a multiple of 128 (lane-dense) dividing the padded width.
    tn = max(128, (min(tn, OP) // 128) * 128)
    while OP % tn:
        tn -= 128
    n_tiles = OP // tn
    # Split tiles across 2 TensorCores (v7x) when there are >= 2 of them; each
    # core rebuilds its own h2 copy (scratch is per-core).
    n_outer = 2 if (n_tiles >= 2 and n_tiles % 2 == 0) else 1
    n_inner = n_tiles // n_outer

    x_bf16 = x.astype(jnp.bfloat16)  # cast once per call, not per tile

    def tile_map(i, j):
        return (0, i * n_inner + j)

    def build_call(single_buffer_residents):
        def resident(a):
            kwargs = {}
            if single_buffer_residents:
                # Constant index map => fetched once; no need to double-buffer.
                kwargs["pipeline_mode"] = pl.Buffered(1)
            return pl.BlockSpec(a.shape, lambda i, j: (0, 0), **kwargs)

        return pl.pallas_call(
            decoder_kernel,
            out_shape=jax.ShapeDtypeStruct((B, OP), jnp.float32),
            grid=(n_outer, n_inner),
            in_specs=[
                resident(x_bf16),
                resident(w1p), resident(g1p), resident(be1p),
                resident(w2p), resident(g2p), resident(be2p),
                pl.BlockSpec((H2P, tn), tile_map),   # w3: N-tiled, pipelined
                pl.BlockSpec((1, tn), tile_map),     # b3 tile
            ],
            out_specs=pl.BlockSpec((B, tn), tile_map),
            scratch_shapes=[pltpu.VMEM((B, H2P), jnp.bfloat16)],  # cached h2
            compiler_params=pltpu.CompilerParams(
                dimension_semantics=("parallel", "arbitrary")),
        )

    args = (x_bf16, w1p, g1p, be1p, w2p, g2p, be2p, w3p, b3p)
    try:
        out_padded = build_call(True)(*args)
    except Exception:
        # pl.Buffered(1) not accepted by this build: default double-buffering.
        out_padded = build_call(False)(*args)

    return out_padded[:, :out_dim]


def init_params(key, latent_dim, hidden_dim, image_channels, image_size):
    out_dim = image_size * image_size * image_channels
    ks = jax.random.split(key, 6)

    def linear_init(kw, kb, fan_in, fan_out):
        bound = 1.0 / jnp.sqrt(fan_in)
        w = jax.random.uniform(kw, (fan_in, fan_out), jnp.float32, -bound, bound)
        b = jax.random.uniform(kb, (1, fan_out), jnp.float32, -bound, bound)
        return w, b

    w1, b1 = linear_init(ks[0], ks[1], latent_dim, hidden_dim)
    w2, b2 = linear_init(ks[2], ks[3], hidden_dim, hidden_dim * 2)
    w3, b3 = linear_init(ks[4], ks[5], hidden_dim * 2, out_dim)

    g1 = jnp.ones((1, hidden_dim), jnp.float32)
    be1 = jnp.zeros((1, hidden_dim), jnp.float32)
    g2 = jnp.ones((1, hidden_dim * 2), jnp.float32)
    be2 = jnp.zeros((1, hidden_dim * 2), jnp.float32)

    return (w1, b1, g1, be1, w2, b2, g2, be2, w3, b3)


def decoder_reference_f32(x, params):
    """PyTorch-semantics reference: f32 throughout, biases included."""
    (w1, b1, g1, be1, w2, b2, g2, be2, w3, b3) = params

    def bn(h, g, be):
        mu = jnp.mean(h, axis=0, keepdims=True)
        var = jnp.mean((h - mu) ** 2, axis=0, keepdims=True)
        return (h - mu) / jnp.sqrt(var + EPS) * g + be

    h = jnp.maximum(bn(x @ w1 + b1, g1, be1), 0.0)
    h = jnp.maximum(bn(h @ w2 + b2, g2, be2), 0.0)
    return h @ w3 + b3


def decoder_reference_mirrored(x, params):
    """Mirrors the kernel math: bf16 MXU operands, f32 accum, bias-free BN layers."""
    (w1, b1, g1, be1, w2, b2, g2, be2, w3, b3) = params

    def block(h_in, w, g, be):
        h = jnp.dot(h_in.astype(jnp.bfloat16), w.astype(jnp.bfloat16),
                    preferred_element_type=jnp.float32)
        mu = jnp.mean(h, axis=0, keepdims=True)
        var = jnp.mean((h - mu) ** 2, axis=0, keepdims=True)
        return jnp.maximum((h - mu) * (jax.lax.rsqrt(var + EPS) * g) + be, 0.0)

    h = block(x, w1, g1, be1)
    h = block(h, w2, g2, be2)
    return jnp.dot(h.astype(jnp.bfloat16), w3.astype(jnp.bfloat16),
                   preferred_element_type=jnp.float32) + b3


if __name__ == "__main__":
    latent_dim = 16
    hidden_dim = 32
    image_channels = 1
    image_size = 8          # output features = 8*8*1 = 64
    batch = 8

    key = jax.random.PRNGKey(0)
    kx, kp = jax.random.split(key)
    x = jax.random.normal(kx, (batch, latent_dim), jnp.float32)
    params = init_params(kp, latent_dim, hidden_dim, image_channels, image_size)

    # One-time parameter preparation (padding + bf16 cast) hoisted off the hot path.
    prep, out_dim = prepare_params(params)

    out = jax.block_until_ready(decoder_forward(x, prep, out_dim))
    assert out.shape == (batch, out_dim)

    # Tight check vs a reference mirroring the kernel's bf16-operand math.
    ref_bf16 = decoder_reference_mirrored(x, params)
    assert jnp.allclose(out, ref_bf16, atol=1e-3, rtol=1e-3), "mismatch vs bf16 reference"

    # Sanity band vs the pure-f32 PyTorch-semantics reference (bf16 MXU inputs).
    ref_f32 = decoder_reference_f32(x, params)
    assert jnp.allclose(out, ref_f32, atol=1e-1, rtol=1e-1), "mismatch vs f32 reference"

    print("KERNEL_OK")
</pallas_src>

<mosaic_0001>
module attributes {stable_mosaic.version = 11 : i64} {
  func.func @decoder_kernel(%arg0: i32, %arg1: i32, %arg2: memref<8x16xbf16, #tpu.memory_space<vmem>>, %arg3: memref<16x128xbf16, #tpu.memory_space<vmem>>, %arg4: memref<1x128xf32, #tpu.memory_space<vmem>>, %arg5: memref<1x128xf32, #tpu.memory_space<vmem>>, %arg6: memref<128x128xbf16, #tpu.memory_space<vmem>>, %arg7: memref<1x128xf32, #tpu.memory_space<vmem>>, %arg8: memref<1x128xf32, #tpu.memory_space<vmem>>, %arg9: memref<128x128xbf16, #tpu.memory_space<vmem>>, %arg10: memref<1x128xf32, #tpu.memory_space<vmem>>, %arg11: memref<8x128xf32, #tpu.memory_space<vmem>>, %arg12: memref<8x128xbf16, #tpu.memory_space<vmem>>) attributes {dimension_semantics = [#tpu.dimension_semantics<parallel>, #tpu.dimension_semantics<arbitrary>], iteration_bounds = array<i64: 1, 1>, scalar_prefetch = 0 : i64, scratch_operands = 1 : i64, tpu.core_type = #tpu.core_type<tc>, window_params = [{pipeline_mode = #tpu.pipeline_mode<synchronous>, transform_indices = @transform_0, window_bounds = array<i64: 8, 16>}, {pipeline_mode = #tpu.pipeline_mode<synchronous>, transform_indices = @transform_1, window_bounds = array<i64: 16, 128>}, {pipeline_mode = #tpu.pipeline_mode<synchronous>, transform_indices = @transform_2, window_bounds = array<i64: 1, 128>}, {pipeline_mode = #tpu.pipeline_mode<synchronous>, transform_indices = @transform_3, window_bounds = array<i64: 1, 128>}, {pipeline_mode = #tpu.pipeline_mode<synchronous>, transform_indices = @transform_4, window_bounds = array<i64: 128, 128>}, {pipeline_mode = #tpu.pipeline_mode<synchronous>, transform_indices = @transform_5, window_bounds = array<i64: 1, 128>}, {pipeline_mode = #tpu.pipeline_mode<synchronous>, transform_indices = @transform_6, window_bounds = array<i64: 1, 128>}, {transform_indices = @transform_7, window_bounds = array<i64: 128, 128>}, {transform_indices = @transform_8, window_bounds = array<i64: 1, 128>}, {transform_indices = @transform_9, window_bounds = array<i64: 8, 128>}]} {
    %c0_i32 = arith.constant 0 : i32
    %0 = arith.cmpi eq, %arg1, %c0_i32 : i32
    %1 = arith.extui %0 : i1 to i32
    %c0_i32_0 = arith.constant 0 : i32
    %2 = arith.cmpi ne, %1, %c0_i32_0 : i32
    scf.if %2 {
      %c0_8 = arith.constant 0 : index
      %c0_9 = arith.constant 0 : index
      %10 = vector.load %arg2[%c0_8, %c0_9] : memref<8x16xbf16, #tpu.memory_space<vmem>>, vector<8x16xbf16>
      %c0_10 = arith.constant 0 : index
      %c0_11 = arith.constant 0 : index
      %11 = vector.load %arg3[%c0_10, %c0_11] : memref<16x128xbf16, #tpu.memory_space<vmem>>, vector<16x128xbf16>
      %cst_12 = arith.constant dense<0.000000e+00> : vector<8x128xf32>
      %12 = tpu.matmul %10, %11, %cst_12 {dimension_numbers = #tpu.dot_dimension_numbers<[1], [0], [0], [1], [0, 0, 1, 1], [], []>} : vector<8x16xbf16>, vector<16x128xbf16>, vector<8x128xf32> -> vector<8x128xf32>
      %cst_13 = arith.constant dense<0.000000e+00> : vector<128xf32>
      %13 = vector.multi_reduction <add>, %12, %cst_13 [0] : vector<8x128xf32> to vector<128xf32>
      %14 = vector.shape_cast %13 : vector<128xf32> to vector<1x128xf32>
      %cst_14 = arith.constant 8.000000e+00 : f32
      %15 = vector.broadcast %cst_14 : f32 to vector<1x128xf32>
      %16 = arith.divf %14, %15 : vector<1x128xf32>
      %17 = vector.broadcast %16 : vector<1x128xf32> to vector<8x128xf32>
      %18 = arith.subf %12, %17 : vector<8x128xf32>
      %19 = arith.mulf %18, %18 : vector<8x128xf32>
      %cst_15 = arith.constant dense<0.000000e+00> : vector<128xf32>
      %20 = vector.multi_reduction <add>, %19, %cst_15 [0] : vector<8x128xf32> to vector<128xf32>
      %21 = vector.shape_cast %20 : vector<128xf32> to vector<1x128xf32>
      %cst_16 = arith.constant 8.000000e+00 : f32
      %22 = vector.broadcast %cst_16 : f32 to vector<1x128xf32>
      %23 = arith.divf %21, %22 : vector<1x128xf32>
      %cst_17 = arith.constant 9.99999974E-6 : f32
      %24 = vector.broadcast %cst_17 : f32 to vector<1x128xf32>
      %25 = arith.addf %23, %24 : vector<1x128xf32>
      %26 = math.rsqrt %25 : vector<1x128xf32>
      %c0_18 = arith.constant 0 : index
      %c0_19 = arith.constant 0 : index
      %27 = vector.load %arg4[%c0_18, %c0_19] : memref<1x128xf32, #tpu.memory_space<vmem>>, vector<1x128xf32>
      %28 = arith.mulf %26, %27 : vector<1x128xf32>
      %29 = vector.broadcast %16 : vector<1x128xf32> to vector<8x128xf32>
      %30 = arith.subf %12, %29 : vector<8x128xf32>
      %31 = vector.broadcast %28 : vector<1x128xf32> to vector<8x128xf32>
      %32 = arith.mulf %30, %31 : vector<8x128xf32>
      %c0_20 = arith.constant 0 : index
      %c0_21 = arith.constant 0 : index
      %33 = vector.load %arg5[%c0_20, %c0_21] : memref<1x128xf32, #tpu.memory_space<vmem>>, vector<1x128xf32>
      %34 = vector.broadcast %33 : vector<1x128xf32> to vector<8x128xf32>
      %35 = arith.addf %32, %34 : vector<8x128xf32>
      %cst_22 = arith.constant 0.000000e+00 : f32
      %36 = vector.broadcast %cst_22 : f32 to vector<8x128xf32>
      %37 = arith.maximumf %35, %36 : vector<8x128xf32>
      %38 = arith.truncf %37 : vector<8x128xf32> to vector<8x128xbf16>
      %c0_23 = arith.constant 0 : index
      %c0_24 = arith.constant 0 : index
      %39 = vector.load %arg6[%c0_23, %c0_24] : memref<128x128xbf16, #tpu.memory_space<vmem>>, vector<128x128xbf16>
      %cst_25 = arith.constant dense<0.000000e+00> : vector<8x128xf32>
      %40 = tpu.matmul %38, %39, %cst_25 {dimension_numbers = #tpu.dot_dimension_numbers<[1], [0], [0], [1], [0, 0, 1, 1], [], []>} : vector<8x128xbf16>, vector<128x128xbf16>, vector<8x128xf32> -> vector<8x128xf32>
      %cst_26 = arith.constant dense<0.000000e+00> : vector<128xf32>
      %41 = vector.multi_reduction <add>, %40, %cst_26 [0] : vector<8x128xf32> to vector<128xf32>
      %42 = vector.shape_cast %41 : vector<128xf32> to vector<1x128xf32>
      %cst_27 = arith.constant 8.000000e+00 : f32
      %43 = vector.broadcast %cst_27 : f32 to vector<1x128xf32>
      %44 = arith.divf %42, %43 : vector<1x128xf32>
      %45 = vector.broadcast %44 : vector<1x128xf32> to vector<8x128xf32>
      %46 = arith.subf %40, %45 : vector<8x128xf32>
      %47 = arith.mulf %46, %46 : vector<8x128xf32>
      %cst_28 = arith.constant dense<0.000000e+00> : vector<128xf32>
      %48 = vector.multi_reduction <add>, %47, %cst_28 [0] : vector<8x128xf32> to vector<128xf32>
      %49 = vector.shape_cast %48 : vector<128xf32> to vector<1x128xf32>
      %cst_29 = arith.constant 8.000000e+00 : f32
      %50 = vector.broadcast %cst_29 : f32 to vector<1x128xf32>
      %51 = arith.divf %49, %50 : vector<1x128xf32>
      %cst_30 = arith.constant 9.99999974E-6 : f32
      %52 = vector.broadcast %cst_30 : f32 to vector<1x128xf32>
      %53 = arith.addf %51, %52 : vector<1x128xf32>
      %54 = math.rsqrt %53 : vector<1x128xf32>
      %c0_31 = arith.constant 0 : index
      %c0_32 = arith.constant 0 : index
      %55 = vector.load %arg7[%c0_31, %c0_32] : memref<1x128xf32, #tpu.memory_space<vmem>>, vector<1x128xf32>
      %56 = arith.mulf %54, %55 : vector<1x128xf32>
      %57 = vector.broadcast %44 : vector<1x128xf32> to vector<8x128xf32>
      %58 = arith.subf %40, %57 : vector<8x128xf32>
      %59 = vector.broadcast %56 : vector<1x128xf32> to vector<8x128xf32>
      %60 = arith.mulf %58, %59 : vector<8x128xf32>
      %c0_33 = arith.constant 0 : index
      %c0_34 = arith.constant 0 : index
      %61 = vector.load %arg8[%c0_33, %c0_34] : memref<1x128xf32, #tpu.memory_space<vmem>>, vector<1x128xf32>
      %62 = vector.broadcast %61 : vector<1x128xf32> to vector<8x128xf32>
      %63 = arith.addf %60, %62 : vector<8x128xf32>
      %cst_35 = arith.constant 0.000000e+00 : f32
      %64 = vector.broadcast %cst_35 : f32 to vector<8x128xf32>
      %65 = arith.maximumf %63, %64 : vector<8x128xf32>
      %66 = arith.truncf %65 : vector<8x128xf32> to vector<8x128xbf16>
      %c0_36 = arith.constant 0 : index
      %c0_37 = arith.constant 0 : index
      %67 = vector.load %arg12[%c0_36, %c0_37] : memref<8x128xbf16, #tpu.memory_space<vmem>>, vector<8x128xbf16>
      tpu.vector_store %arg12[%c0_36, %c0_37], %66 {strides = array<i32>} : memref<8x128xbf16, #tpu.memory_space<vmem>>, vector<8x128xbf16>,
    } else {
    }
    %c0 = arith.constant 0 : index
    %c0_1 = arith.constant 0 : index
    %3 = vector.load %arg12[%c0, %c0_1] : memref<8x128xbf16, #tpu.memory_space<vmem>>, vector<8x128xbf16>
    %c0_2 = arith.constant 0 : index
    %c0_3 = arith.constant 0 : index
    %4 = vector.load %arg9[%c0_2, %c0_3] : memref<128x128xbf16, #tpu.memory_space<vmem>>, vector<128x128xbf16>
    %cst = arith.constant dense<0.000000e+00> : vector<8x128xf32>
    %5 = tpu.matmul %3, %4, %cst {dimension_numbers = #tpu.dot_dimension_numbers<[1], [0], [0], [1], [0, 0, 1, 1], [], []>} : vector<8x128xbf16>, vector<128x128xbf16>, vector<8x128xf32> -> vector<8x128xf32>
    %c0_4 = arith.constant 0 : index
    %c0_5 = arith.constant 0 : index
    %6 = vector.load %arg10[%c0_4, %c0_5] : memref<1x128xf32, #tpu.memory_space<vmem>>, vector<1x128xf32>
    %7 = vector.broadcast %6 : vector<1x128xf32> to vector<8x128xf32>
    %8 = arith.addf %5, %7 : vector<8x128xf32>
    %c0_6 = arith.constant 0 : index
    %c0_7 = arith.constant 0 : index
    %9 = vector.load %arg11[%c0_6, %c0_7] : memref<8x128xf32, #tpu.memory_space<vmem>>, vector<8x128xf32>
    tpu.vector_store %arg11[%c0_6, %c0_7], %8 {strides = array<i32>} : memref<8x128xf32, #tpu.memory_space<vmem>>, vector<8x128xf32>,
    return
  }
  func.func @transform_0(%arg0: i32, %arg1: i32) -> (i32, i32) {
    %c0_i32 = arith.constant 0 : i32
    %c0_i32_0 = arith.constant 0 : i32
    %c0_i32_1 = arith.constant 0 : i32
    return %c0_i32, %c0_i32_0 : i32, i32
  }
  func.func @transform_1(%arg0: i32, %arg1: i32) -> (i32, i32) {
    %c0_i32 = arith.constant 0 : i32
    %c0_i32_0 = arith.constant 0 : i32
    %c0_i32_1 = arith.constant 0 : i32
    return %c0_i32, %c0_i32_0 : i32, i32
  }
  func.func @transform_2(%arg0: i32, %arg1: i32) -> (i32, i32) {
    %c0_i32 = arith.constant 0 : i32
    %c0_i32_0 = arith.constant 0 : i32
    %c0_i32_1 = arith.constant 0 : i32
    return %c0_i32, %c0_i32_0 : i32, i32
  }
  func.func @transform_3(%arg0: i32, %arg1: i32) -> (i32, i32) {
    %c0_i32 = arith.constant 0 : i32
    %c0_i32_0 = arith.constant 0 : i32
    %c0_i32_1 = arith.constant 0 : i32
    return %c0_i32, %c0_i32_0 : i32, i32
  }
  func.func @transform_4(%arg0: i32, %arg1: i32) -> (i32, i32) {
    %c0_i32 = arith.constant 0 : i32
    %c0_i32_0 = arith.constant 0 : i32
    %c0_i32_1 = arith.constant 0 : i32
    return %c0_i32, %c0_i32_0 : i32, i32
  }
  func.func @transform_5(%arg0: i32, %arg1: i32) -> (i32, i32) {
    %c0_i32 = arith.constant 0 : i32
    %c0_i32_0 = arith.constant 0 : i32
    %c0_i32_1 = arith.constant 0 : i32
    return %c0_i32, %c0_i32_0 : i32, i32
  }
  func.func @transform_6(%arg0: i32, %arg1: i32) -> (i32, i32) {
    %c0_i32 = arith.constant 0 : i32
    %c0_i32_0 = arith.constant 0 : i32
    %c0_i32_1 = arith.constant 0 : i32
    return %c0_i32, %c0_i32_0 : i32, i32
  }
  func.func @transform_7(%arg0: i32, %arg1: i32) -> (i32, i32) {
    %c1_i32 = arith.constant 1 : i32
    %0 = arith.muli %arg0, %c1_i32 : i32
    %1 = arith.addi %0, %arg1 : i32
    %c0_i32 = arith.constant 0 : i32
    %c0_i32_0 = arith.constant 0 : i32
    return %c0_i32, %1 : i32, i32
  }
  func.func @transform_8(%arg0: i32, %arg1: i32) -> (i32, i32) {
    %c1_i32 = arith.constant 1 : i32
    %0 = arith.muli %arg0, %c1_i32 : i32
    %1 = arith.addi %0, %arg1 : i32
    %c0_i32 = arith.constant 0 : i32
    %c0_i32_0 = arith.constant 0 : i32
    return %c0_i32, %1 : i32, i32
  }
  func.func @transform_9(%arg0: i32, %arg1: i32) -> (i32, i32) {
    %c1_i32 = arith.constant 1 : i32
    %0 = arith.muli %arg0, %c1_i32 : i32
    %1 = arith.addi %0, %arg1 : i32
    %c0_i32 = arith.constant 0 : i32
    %c0_i32_0 = arith.constant 0 : i32
    return %c0_i32, %1 : i32, i32
  }
}

module attributes {stable_mosaic.version = 11 : i64} {
  func.func @decoder_kernel(%arg0: i32, %arg1: i32, %arg2: memref<8x16xbf16, #tpu.memory_space<vmem>>, %arg3: memref<16x128xbf16, #tpu.memory_space<vmem>>, %arg4: memref<1x128xf32, #tpu.memory_space<vmem>>, %arg5: memref<1x128xf32, #tpu.memory_space<vmem>>, %arg6: memref<128x128xbf16, #tpu.memory_space<vmem>>, %arg7: memref<1x128xf32, #tpu.memory_space<vmem>>, %arg8: memref<1x128xf32, #tpu.memory_space<vmem>>, %arg9: memref<128x128xbf16, #tpu.memory_space<vmem>>, %arg10: memref<1x128xf32, #tpu.memory_space<vmem>>, %arg11: memref<8x128xf32, #tpu.memory_space<vmem>>, %arg12: memref<8x128xbf16, #tpu.memory_space<vmem>>) attributes {dimension_semantics = [#tpu.dimension_semantics<parallel>, #tpu.dimension_semantics<arbitrary>], iteration_bounds = array<i64: 1, 1>, scalar_prefetch = 0 : i64, scratch_operands = 1 : i64, tpu.core_type = #tpu.core_type<tc>, window_params = [{pipeline_mode = #tpu.pipeline_mode<synchronous>, transform_indices = @transform_0, window_bounds = array<i64: 8, 16>}, {pipeline_mode = #tpu.pipeline_mode<synchronous>, transform_indices = @transform_1, window_bounds = array<i64: 16, 128>}, {pipeline_mode = #tpu.pipeline_mode<synchronous>, transform_indices = @transform_2, window_bounds = array<i64: 1, 128>}, {pipeline_mode = #tpu.pipeline_mode<synchronous>, transform_indices = @transform_3, window_bounds = array<i64: 1, 128>}, {pipeline_mode = #tpu.pipeline_mode<synchronous>, transform_indices = @transform_4, window_bounds = array<i64: 128, 128>}, {pipeline_mode = #tpu.pipeline_mode<synchronous>, transform_indices = @transform_5, window_bounds = array<i64: 1, 128>}, {pipeline_mode = #tpu.pipeline_mode<synchronous>, transform_indices = @transform_6, window_bounds = array<i64: 1, 128>}, {transform_indices = @transform_7, window_bounds = array<i64: 128, 128>}, {transform_indices = @transform_8, window_bounds = array<i64: 1, 128>}, {transform_indices = @transform_9, window_bounds = array<i64: 8, 128>}]} {
    %c0_i32 = arith.constant 0 : i32
    %0 = arith.cmpi eq, %arg1, %c0_i32 : i32
    %1 = arith.extui %0 : i1 to i32
    %c0_i32_0 = arith.constant 0 : i32
    %2 = arith.cmpi ne, %1, %c0_i32_0 : i32
    scf.if %2 {
      %c0_8 = arith.constant 0 : index
      %c0_9 = arith.constant 0 : index
      %10 = vector.load %arg2[%c0_8, %c0_9] : memref<8x16xbf16, #tpu.memory_space<vmem>>, vector<8x16xbf16>
      %c0_10 = arith.constant 0 : index
      %c0_11 = arith.constant 0 : index
      %11 = vector.load %arg3[%c0_10, %c0_11] : memref<16x128xbf16, #tpu.memory_space<vmem>>, vector<16x128xbf16>
      %cst_12 = arith.constant dense<0.000000e+00> : vector<8x128xf32>
      %12 = tpu.matmul %10, %11, %cst_12 {dimension_numbers = #tpu.dot_dimension_numbers<[1], [0], [0], [1], [0, 0, 1, 1], [], []>} : vector<8x16xbf16>, vector<16x128xbf16>, vector<8x128xf32> -> vector<8x128xf32>
      %cst_13 = arith.constant dense<0.000000e+00> : vector<128xf32>
      %13 = vector.multi_reduction <add>, %12, %cst_13 [0] : vector<8x128xf32> to vector<128xf32>
      %14 = vector.shape_cast %13 : vector<128xf32> to vector<1x128xf32>
      %cst_14 = arith.constant 8.000000e+00 : f32
      %15 = vector.broadcast %cst_14 : f32 to vector<1x128xf32>
      %16 = arith.divf %14, %15 : vector<1x128xf32>
      %17 = vector.broadcast %16 : vector<1x128xf32> to vector<8x128xf32>
      %18 = arith.subf %12, %17 : vector<8x128xf32>
      %19 = arith.mulf %18, %18 : vector<8x128xf32>
      %cst_15 = arith.constant dense<0.000000e+00> : vector<128xf32>
      %20 = vector.multi_reduction <add>, %19, %cst_15 [0] : vector<8x128xf32> to vector<128xf32>
      %21 = vector.shape_cast %20 : vector<128xf32> to vector<1x128xf32>
      %cst_16 = arith.constant 8.000000e+00 : f32
      %22 = vector.broadcast %cst_16 : f32 to vector<1x128xf32>
      %23 = arith.divf %21, %22 : vector<1x128xf32>
      %cst_17 = arith.constant 9.99999974E-6 : f32
      %24 = vector.broadcast %cst_17 : f32 to vector<1x128xf32>
      %25 = arith.addf %23, %24 : vector<1x128xf32>
      %26 = math.rsqrt %25 : vector<1x128xf32>
      %c0_18 = arith.constant 0 : index
      %c0_19 = arith.constant 0 : index
      %27 = vector.load %arg4[%c0_18, %c0_19] : memref<1x128xf32, #tpu.memory_space<vmem>>, vector<1x128xf32>
      %28 = arith.mulf %26, %27 : vector<1x128xf32>
      %29 = vector.broadcast %16 : vector<1x128xf32> to vector<8x128xf32>
      %30 = arith.subf %12, %29 : vector<8x128xf32>
      %31 = vector.broadcast %28 : vector<1x128xf32> to vector<8x128xf32>
      %32 = arith.mulf %30, %31 : vector<8x128xf32>
      %c0_20 = arith.constant 0 : index
      %c0_21 = arith.constant 0 : index
      %33 = vector.load %arg5[%c0_20, %c0_21] : memref<1x128xf32, #tpu.memory_space<vmem>>, vector<1x128xf32>
      %34 = vector.broadcast %33 : vector<1x128xf32> to vector<8x128xf32>
      %35 = arith.addf %32, %34 : vector<8x128xf32>
      %cst_22 = arith.constant 0.000000e+00 : f32
      %36 = vector.broadcast %cst_22 : f32 to vector<8x128xf32>
      %37 = arith.maximumf %35, %36 : vector<8x128xf32>
      %38 = arith.truncf %37 : vector<8x128xf32> to vector<8x128xbf16>
      %c0_23 = arith.constant 0 : index
      %c0_24 = arith.constant 0 : index
      %39 = vector.load %arg6[%c0_23, %c0_24] : memref<128x128xbf16, #tpu.memory_space<vmem>>, vector<128x128xbf16>
      %cst_25 = arith.constant dense<0.000000e+00> : vector<8x128xf32>
      %40 = tpu.matmul %38, %39, %cst_25 {dimension_numbers = #tpu.dot_dimension_numbers<[1], [0], [0], [1], [0, 0, 1, 1], [], []>} : vector<8x128xbf16>, vector<128x128xbf16>, vector<8x128xf32> -> vector<8x128xf32>
      %cst_26 = arith.constant dense<0.000000e+00> : vector<128xf32>
      %41 = vector.multi_reduction <add>, %40, %cst_26 [0] : vector<8x128xf32> to vector<128xf32>
      %42 = vector.shape_cast %41 : vector<128xf32> to vector<1x128xf32>
      %cst_27 = arith.constant 8.000000e+00 : f32
      %43 = vector.broadcast %cst_27 : f32 to vector<1x128xf32>
      %44 = arith.divf %42, %43 : vector<1x128xf32>
      %45 = vector.broadcast %44 : vector<1x128xf32> to vector<8x128xf32>
      %46 = arith.subf %40, %45 : vector<8x128xf32>
      %47 = arith.mulf %46, %46 : vector<8x128xf32>
      %cst_28 = arith.constant dense<0.000000e+00> : vector<128xf32>
      %48 = vector.multi_reduction <add>, %47, %cst_28 [0] : vector<8x128xf32> to vector<128xf32>
      %49 = vector.shape_cast %48 : vector<128xf32> to vector<1x128xf32>
      %cst_29 = arith.constant 8.000000e+00 : f32
      %50 = vector.broadcast %cst_29 : f32 to vector<1x128xf32>
      %51 = arith.divf %49, %50 : vector<1x128xf32>
      %cst_30 = arith.constant 9.99999974E-6 : f32
      %52 = vector.broadcast %cst_30 : f32 to vector<1x128xf32>
      %53 = arith.addf %51, %52 : vector<1x128xf32>
      %54 = math.rsqrt %53 : vector<1x128xf32>
      %c0_31 = arith.constant 0 : index
      %c0_32 = arith.constant 0 : index
      %55 = vector.load %arg7[%c0_31, %c0_32] : memref<1x128xf32, #tpu.memory_space<vmem>>, vector<1x128xf32>
      %56 = arith.mulf %54, %55 : vector<1x128xf32>
      %57 = vector.broadcast %44 : vector<1x128xf32> to vector<8x128xf32>
      %58 = arith.subf %40, %57 : vector<8x128xf32>
      %59 = vector.broadcast %56 : vector<1x128xf32> to vector<8x128xf32>
      %60 = arith.mulf %58, %59 : vector<8x128xf32>
      %c0_33 = arith.constant 0 : index
      %c0_34 = arith.constant 0 : index
      %61 = vector.load %arg8[%c0_33, %c0_34] : memref<1x128xf32, #tpu.memory_space<vmem>>, vector<1x128xf32>
      %62 = vector.broadcast %61 : vector<1x128xf32> to vector<8x128xf32>
      %63 = arith.addf %60, %62 : vector<8x128xf32>
      %cst_35 = arith.constant 0.000000e+00 : f32
      %64 = vector.broadcast %cst_35 : f32 to vector<8x128xf32>
      %65 = arith.maximumf %63, %64 : vector<8x128xf32>
      %66 = arith.truncf %65 : vector<8x128xf32> to vector<8x128xbf16>
      %c0_36 = arith.constant 0 : index
      %c0_37 = arith.constant 0 : index
      %67 = vector.load %arg12[%c0_36, %c0_37] : memref<8x128xbf16, #tpu.memory_space<vmem>>, vector<8x128xbf16>
      tpu.vector_store %arg12[%c0_36, %c0_37], %66 {strides = array<i32>} : memref<8x128xbf16, #tpu.memory_space<vmem>>, vector<8x128xbf16>,
    } else {
    }
    %c0 = arith.constant 0 : index
    %c0_1 = arith.constant 0 : index
    %3 = vector.load %arg12[%c0, %c0_1] : memref<8x128xbf16, #tpu.memory_space<vmem>>, vector<8x128xbf16>
    %c0_2 = arith.constant 0 : index
    %c0_3 = arith.constant 0 : index
    %4 = vector.load %arg9[%c0_2, %c0_3] : memref<128x128xbf16, #tpu.memory_space<vmem>>, vector<128x128xbf16>
    %cst = arith.constant dense<0.000000e+00> : vector<8x128xf32>
    %5 = tpu.matmul %3, %4, %cst {dimension_numbers = #tpu.dot_dimension_numbers<[1], [0], [0], [1], [0, 0, 1, 1], [], []>} : vector<8x128xbf16>, vector<128x128xbf16>, vector<8x128xf32> -> vector<8x128xf32>
    %c0_4 = arith.constant 0 : index
    %c0_5 = arith.constant 0 : index
    %6 = vector.load %arg10[%c0_4, %c0_5] : memref<1x128xf32, #tpu.memory_space<vmem>>, vector<1x128xf32>
    %7 = vector.broadcast %6 : vector<1x128xf32> to vector<8x128xf32>
    %8 = arith.addf %5, %7 : vector<8x128xf32>
    %c0_6 = arith.constant 0 : index
    %c0_7 = arith.constant 0 : index
    %9 = vector.load %arg11[%c0_6, %c0_7] : memref<8x128xf32, #tpu.memory_space<vmem>>, vector<8x128xf32>
    tpu.vector_store %arg11[%c0_6, %c0_7], %8 {strides = array<i32>} : memref<8x128xf32, #tpu.memory_space<vmem>>, vector<8x128xf32>,
    return
  }
  func.func @transform_0(%arg0: i32, %arg1: i32) -> (i32, i32) {
    %c0_i32 = arith.constant 0 : i32
    %c0_i32_0 = arith.constant 0 : i32
    %c0_i32_1 = arith.constant 0 : i32
    return %c0_i32, %c0_i32_0 : i32, i32
  }
  func.func @transform_1(%arg0: i32, %arg1: i32) -> (i32, i32) {
    %c0_i32 = arith.constant 0 : i32
    %c0_i32_0 = arith.constant 0 : i32
    %c0_i32_1 = arith.constant 0 : i32
    return %c0_i32, %c0_i32_0 : i32, i32
  }
  func.func @transform_2(%arg0: i32, %arg1: i32) -> (i32, i32) {
    %c0_i32 = arith.constant 0 : i32
    %c0_i32_0 = arith.constant 0 : i32
    %c0_i32_1 = arith.constant 0 : i32
    return %c0_i32, %c0_i32_0 : i32, i32
  }
  func.func @transform_3(%arg0: i32, %arg1: i32) -> (i32, i32) {
    %c0_i32 = arith.constant 0 : i32
    %c0_i32_0 = arith.constant 0 : i32
    %c0_i32_1 = arith.constant 0 : i32
    return %c0_i32, %c0_i32_0 : i32, i32
  }
  func.func @transform_4(%arg0: i32, %arg1: i32) -> (i32, i32) {
    %c0_i32 = arith.constant 0 : i32
    %c0_i32_0 = arith.constant 0 : i32
    %c0_i32_1 = arith.constant 0 : i32
    return %c0_i32, %c0_i32_0 : i32, i32
  }
  func.func @transform_5(%arg0: i32, %arg1: i32) -> (i32, i32) {
    %c0_i32 = arith.constant 0 : i32
    %c0_i32_0 = arith.constant 0 : i32
    %c0_i32_1 = arith.constant 0 : i32
    return %c0_i32, %c0_i32_0 : i32, i32
  }
  func.func @transform_6(%arg0: i32, %arg1: i32) -> (i32, i32) {
    %c0_i32 = arith.constant 0 : i32
    %c0_i32_0 = arith.constant 0 : i32
    %c0_i32_1 = arith.constant 0 : i32
    return %c0_i32, %c0_i32_0 : i32, i32
  }
  func.func @transform_7(%arg0: i32, %arg1: i32) -> (i32, i32) {
    %c1_i32 = arith.constant 1 : i32
    %0 = arith.muli %arg0, %c1_i32 : i32
    %1 = arith.addi %0, %arg1 : i32
    %c0_i32 = arith.constant 0 : i32
    %c0_i32_0 = arith.constant 0 : i32
    return %c0_i32, %1 : i32, i32
  }
  func.func @transform_8(%arg0: i32, %arg1: i32) -> (i32, i32) {
    %c1_i32 = arith.constant 1 : i32
    %0 = arith.muli %arg0, %c1_i32 : i32
    %1 = arith.addi %0, %arg1 : i32
    %c0_i32 = arith.constant 0 : i32
    %c0_i32_0 = arith.constant 0 : i32
    return %c0_i32, %1 : i32, i32
  }
  func.func @transform_9(%arg0: i32, %arg1: i32) -> (i32, i32) {
    %c1_i32 = arith.constant 1 : i32
    %0 = arith.muli %arg0, %c1_i32 : i32
    %1 = arith.addi %0, %arg1 : i32
    %c0_i32 = arith.constant 0 : i32
    %c0_i32_0 = arith.constant 0 : i32
    return %c0_i32, %1 : i32, i32
  }
}

</mosaic_0001>

<bundles_post_ra>
// kernel: tpu_custom_call.1
= control target key start
LH: loop header
LB: loop body
LE: loop exit
PB: predicated region body
PF: predicated region fallthrough
CT: control target
= control target key end

     0   :  { %14 = vsyncpa [#allocation4], 0  ;;  %s873_s0 = inlined_call_operand.hbm [shape: bf16[8,16], index: 0, kind: input, shape index: {}]   ;;  %s874_s1 = inlined_call_operand.hbm [shape: bf16[16,128], index: 1, kind: input, shape index: {}]   ;;  %s875_s2 = inlined_call_operand.vmem [shape: f32[1,128], index: 2, kind: input, shape index: {}]   ;;  %s876_s3 = inlined_call_operand.vmem [shape: f32[1,128], index: 3, kind: input, shape index: {}]   ;;  %s877_s4 = inlined_call_operand.hbm [shape: bf16[128,128], index: 4, kind: input, shape index: {}]   ;;  %s878_s5 = inlined_call_operand.vmem [shape: f32[1,128], index: 5, kind: input, shape index: {}]   ;;  %s879_s6 = inlined_call_operand.vmem [shape: f32[1,128], index: 6, kind: input, shape index: {}]   ;;  %s880_s7 = inlined_call_operand.hbm [shape: bf16[128,128], index: 7, kind: input, shape index: {}]   ;;  %s881_s8 = inlined_call_operand.vmem [shape: f32[1,128], index: 8, kind: input, shape index: {}]   ;;  %s882_s9 = inlined_call_operand.hbm [shape: f32[8,128], index: 9, kind: output, shape index: {}]  }
   0x1   :  { %15 = vsyncpa [#allocation7], 0 }
   0x2   :  { %16 = vsyncpa [#allocation10], 0 }
   0x3   :  { %17 = vsyncpa [#allocation5], 0  ;;  %s710_s30 = smov [#allocation6]   ;;  %s592_s13 = scalar_lea.hbm %s874_s1, 128 }
   0x4   :  { %s33_s10 = sshll.u32 %s710_s30, 4  ;;  %p593_p0 = scmp.ne.s32.totalorder %s874_s1, %s592_s13  ;;  %s34_s10 = int_to_ptr.vmem [resolvable:$true] %s33_s10 }
   0x5   :  { %p596_p1 = scmp.lt.u32.totalorder %s592_s13, %s874_s1 }
   0x7   :  { %p598_p2 = pnand %p596_p1, %p593_p0 }
   0x9   :  { %601 = shalt.err (!%p598_p2)
}
   0xa   :  { %s602_s18 = scalar_lea.vmem %s34_s10, 128  ;;  %p607_p4 = scmp.lt.s32.totalorder %s34_s10, %s34_s10 }
   0xb   :  { %p603_p3 = scmp.ne.s32.totalorder %s34_s10, %s602_s18  ;;  %p608_p5 = scmp.lt.s32.totalorder %s602_s18, %s602_s18 }
   0xd   :  { %p609_p6 = por %p608_p5, %p607_p4 }
   0xf   :  { %p610_p7 = pnand %p609_p6, %p603_p3 }
  0x11   :  { %613 = shalt.err (!%p610_p7)
}
  0x12   :  { %s711_s19 = smov 64   ;;  %s712_s20 = smov 4  }
  0x13   :  { %39 = dma.hbm_to_vmem [thread:$0]  %s874_s1, 128, %s34_s10, [#allocation7], %s711_s19, %s711_s19, %s712_s20  }
  0x14   :  { %s713_s23 = smov [#allocation3]   ;;  %s714_s25 = smov [#allocation8]  }
  0x15   :  { %s24_s24 = sshll.u32 %s713_s23, 4  ;;  %s49_s26 = sshll.u32 %s714_s25, 4  ;;  %s25_s24 = int_to_ptr.vmem [resolvable:$true] %s24_s24  ;;  %s50_s26 = int_to_ptr.vmem [resolvable:$true] %s49_s26 }
  0x16   :  { %s614_s29 = scalar_lea.hbm %s873_s0, 64 }
  0x17   :  { %p615_p8 = scmp.ne.s32.totalorder %s873_s0, %s614_s29  ;;  %p618_p9 = scmp.lt.u32.totalorder %s614_s29, %s873_s0 }
  0x19   :  { %p620_p10 = pnand %p618_p9, %p615_p8 }
  0x1b   :  { %623 = shalt.err (!%p620_p10)
}
  0x1c   :  { %s624_s1 = scalar_lea.vmem %s25_s24, 64  ;;  %p629_p12 = scmp.lt.s32.totalorder %s25_s24, %s25_s24 }
  0x1d   :  { %p625_p11 = scmp.ne.s32.totalorder %s25_s24, %s624_s1  ;;  %p630_p13 = scmp.lt.s32.totalorder %s624_s1, %s624_s1 }
  0x1f   :  { %p631_p0 = por %p630_p13, %p629_p12 }
  0x21   :  { %p632_p1 = pnand %p631_p0, %p625_p11 }
  0x23   :  { %635 = shalt.err (!%p632_p1)
}
  0x24   :  { %27 = dma.hbm_to_vmem [thread:$0]  %s873_s0, 64, %s25_s24, [#allocation4]  }
  0x25   :  { %s636_s17 = scalar_lea.hbm %s877_s4, 1024 }
  0x26   :  { %p637_p2 = scmp.ne.s32.totalorder %s877_s4, %s636_s17  ;;  %p640_p3 = scmp.lt.u32.totalorder %s636_s17, %s877_s4 }
  0x28   :  { %p642_p4 = pnand %p640_p3, %p637_p2 }
  0x2a   :  { %645 = shalt.err (!%p642_p4)
}
  0x2b   :  { %s646_s25 = scalar_lea.vmem %s50_s26, 1024  ;;  %p651_p6 = scmp.lt.s32.totalorder %s50_s26, %s50_s26 }
  0x2c   :  { %p647_p5 = scmp.ne.s32.totalorder %s50_s26, %s646_s25  ;;  %p652_p7 = scmp.lt.s32.totalorder %s646_s25, %s646_s25 }
  0x2e   :  { %p653_p8 = por %p652_p7, %p651_p6 }
  0x30   :  { %p654_p9 = pnand %p653_p8, %p647_p5 }
  0x32   :  { %657 = shalt.err (!%p654_p9)
}
  0x33   :  { %55 = dma.hbm_to_vmem [thread:$0]  %s877_s4, 1024, %s50_s26, [#allocation7], %s711_s19, %s711_s19, %s712_s20  }
  0x34   :  { %s715_s27 = smov [#allocation9]   ;;  %s658_s11 = scalar_lea.hbm %s880_s7, 1024 }
  0x35   :  { %s68_s28 = sshll.u32 %s715_s27, 4  ;;  %p659_p10 = scmp.ne.s32.totalorder %s880_s7, %s658_s11  ;;  %s69_s28 = int_to_ptr.vmem [resolvable:$true] %s68_s28 }
  0x36   :  { %p662_p11 = scmp.lt.u32.totalorder %s658_s11, %s880_s7 }
  0x38   :  { %p664_p12 = pnand %p662_p11, %p659_p10 }
  0x3a   :  { %667 = shalt.err (!%p664_p12)
}
  0x3b   :  { %s668_s14 = scalar_lea.vmem %s69_s28, 1024  ;;  %p673_p0 = scmp.lt.s32.totalorder %s69_s28, %s69_s28 }
  0x3c   :  { %p669_p13 = scmp.ne.s32.totalorder %s69_s28, %s668_s14  ;;  %p674_p1 = scmp.lt.s32.totalorder %s668_s14, %s668_s14 }
  0x3e   :  { %p675_p2 = por %p674_p1, %p673_p0 }
  0x40   :  { %p676_p3 = pnand %p675_p2, %p669_p13 }
  0x42   :  { %679 = shalt.err (!%p676_p3)
}
  0x43   :  { %74 = dma.hbm_to_vmem [thread:$0]  %s880_s7, 1024, %s69_s28, [#allocation10], %s711_s19, %s711_s19, %s712_s20  }
  0x44   :  { %702 = dma.done.wait [#allocation4], 64  }
  0x45   :  { %703 = vsyncadd [#allocation4], 4294967232 }
  0x46   :  { %704 = dma.done.wait [#allocation7], 1152  }
  0x47   :  { %705 = vsyncadd [#allocation7], 4294966144 }
  0x48   :  { %706 = dma.done.wait [#allocation10], 1024  }
  0x49   :  { %707 = vsyncadd [#allocation10], 4294966272  ;;  %v716_v0 = vmov 0.0   ;;  %vm717_vm0 = vmmov 0   ;;  %v571_v1 = vld [vmem:[#allocation6] sm:$0xff]   ;;  %vm119_vm1 = vcmask 130048   ;;  %v184_v32 = vlaneseq }
  0x4a   :  { %516 = vmatprep.subr.bf16.mxu0 %v716_v0  ;;  %518 = vmatprep.mubr.msk.bf16.mxu0 %vm717_vm0, %v716_v0  ;;  %v110_v2 = vld [vmem:[#allocation3] sm:$0xf]  ;;  %v572_v3 = vld [vmem:[#allocation8] sm:$0xff]   ;;  %v573_v4 = vld [vmem:[#allocation8 + $0x8] sm:$0xff]   ;;  %s718_s22 = smov [#allocation11]  }
  0x4b   :  { %522 = vmatprep.subr.bf16.mxu1 %v716_v0  ;;  %538 = vmatprep.mubr.msk.bf16.mxu1 %vm717_vm0, %v716_v0  ;;  %v574_v5 = vld [vmem:[#allocation8 + $0x10] sm:$0xff]   ;;  %v575_v6 = vld [vmem:[#allocation8 + $0x18] sm:$0xff]   ;;  %v576_v7 = vld [vmem:[#allocation8 + $0x20] sm:$0xff]   ;;  %v185_v33 = vshrl.u32 %v184_v32, 7 }
  0x4c   :  { %517 = vmatpush3.bf16.msra.mxu0 %v571_v1  ;;  %523 = vmatpush3.bf16.msra.mxu1 %v572_v3  ;;  %v577_v8 = vld [vmem:[#allocation8 + $0x28] sm:$0xff]   ;;  %v578_v9 = vld [vmem:[#allocation8 + $0x30] sm:$0xff]   ;;  %v579_v10 = vld [vmem:[#allocation8 + $0x38] sm:$0xff]  }
  0x4d   :  { %542 = vmatprep.subr.bf16.mxu0 %v716_v0  ;;  %524 = vmatprep.subr.bf16.mxu1 %v716_v0  ;;  %v182_v34 = vld [vmem:[%s875_s2] sm:$0x1]  ;;  %v186_v35 = vsub.s32 0, %v185_v33  ;;  %v580_v44 = vld [vmem:[#allocation9] sm:$0xff]   ;;  %v581_v45 = vld [vmem:[#allocation9 + $0x8] sm:$0xff]  }
  0x4e   :  { %v477_v39 = vld [vmem:[%s876_s3] ss:$0 sm:$0xff]  ;;  %v583_v47 = vld [vmem:[#allocation9 + $0x18] sm:$0xff]   ;;  %v584_v48 = vld [vmem:[#allocation9 + $0x20] sm:$0xff]  }
  0x4f   :  { %519 = vmatmul.mubr.msk.bf16.vlgmr.msra.gmra.mrb[0].mxu0 %vm119_vm1, %v110_v2  ;;  %v582_v46 = vld [vmem:[#allocation9 + $0x10] sm:$0xff]   ;;  %v585_v49 = vld [vmem:[#allocation9 + $0x28] sm:$0xff]   ;;  %v587_v51 = vld [vmem:[#allocation9 + $0x38] sm:$0xff]  }
  0x50   :  { %558 = vmatprep.mubr.msk.bf16.mxu0 %vm717_vm0, %v716_v0  ;;  %525 = vmatpush3.bf16.msra.mxu1 %v573_v4  ;;  %v586_v50 = vld [vmem:[#allocation9 + $0x30] sm:$0xff]  }
  0x51   :  { %526 = vmatprep.subr.bf16.mxu1 %v716_v0  ;;  %543 = vmatpush3.bf16.msra.mxu0 %v580_v44 }
  0x52   :  { %544 = vmatprep.subr.bf16.mxu0 %v716_v0 }
  0x54   :  { %527 = vmatpush3.bf16.msra.mxu1 %v574_v5 }
  0x55   :  { %528 = vmatprep.subr.bf16.mxu1 %v716_v0  ;;  %545 = vmatpush3.bf16.msra.mxu0 %v581_v45 }
  0x56   :  { %546 = vmatprep.subr.bf16.mxu0 %v716_v0 }
  0x58   :  { %529 = vmatpush3.bf16.msra.mxu1 %v575_v6 }
  0x59   :  { %530 = vmatprep.subr.bf16.mxu1 %v716_v0  ;;  %547 = vmatpush3.bf16.msra.mxu0 %v582_v46 }
  0x5a   :  { %548 = vmatprep.subr.bf16.mxu0 %v716_v0 }
  0x5c   :  { %531 = vmatpush3.bf16.msra.mxu1 %v576_v7 }
  0x5d   :  { %532 = vmatprep.subr.bf16.mxu1 %v716_v0  ;;  %549 = vmatpush3.bf16.msra.mxu0 %v583_v47 }
  0x5e   :  { %550 = vmatprep.subr.bf16.mxu0 %v716_v0 }
  0x60   :  { %533 = vmatpush3.bf16.msra.mxu1 %v577_v8 }
  0x61   :  { %534 = vmatprep.subr.bf16.mxu1 %v716_v0  ;;  %551 = vmatpush3.bf16.msra.mxu0 %v584_v48 }
  0x62   :  { %552 = vmatprep.subr.bf16.mxu0 %v716_v0 }
  0x64   :  { %535 = vmatpush3.bf16.msra.mxu1 %v578_v9  ;;  %v321_v9 = vld [vmem:[%s878_s5] sm:$0x1]  ;;  %s461_s5 = sshll.u32 %s718_s22, 4  ;;  %s462_s5 = int_to_ptr.vmem [resolvable:$true] %s461_s5 }
  0x65   :  { %536 = vmatprep.subr.bf16.mxu1 %v716_v0  ;;  %553 = vmatpush3.bf16.msra.mxu0 %v585_v49  ;;  %p685_p5 = scmp.lt.s32.totalorder %s462_s5, %s462_s5 }
  0x66   :  { %554 = vmatprep.subr.bf16.mxu0 %v716_v0 }
  0x68   :  { %537 = vmatpush3.bf16.msra.mxu1 %v579_v10 }
  0x69   :  { %555 = vmatpush3.bf16.msra.mxu0 %v586_v50 }
  0x6a   :  { %556 = vmatprep.subr.bf16.mxu0 %v716_v0 }
  0x6d   :  { %557 = vmatpush3.bf16.msra.mxu0 %v587_v51 }
 0x122   :  { %v157_v11 = vpop.f32.mrb[0].mxu0 }
 0x123   :  { %v163_v12 = vrot.slane %v157_v11, 4  ;;  %v520_v13 = vpop.f32.mrb[1].mxu0 }
 0x124   :  { %v160_v14 = vpop.f32.mrb[2].mxu0  ;;  %v486_v13 = vld [vmem:[%s879_s6] ss:$0 sm:$0xff]  ;;  %s680_s6 = scalar_lea.vmem %s462_s5, 128 }
 0x125   :  { %v164_v15 = vadd.f32 %v163_v12, %v157_v11  ;;  %v521_v16 = vpop.f32.mrb[3].mxu0  ;;  %p681_p4 = scmp.ne.s32.totalorder %s462_s5, %s680_s6  ;;  %p686_p6 = scmp.lt.s32.totalorder %s680_s6, %s680_s6 }
 0x127   :  { %v165_v17 = vrot.slane %v164_v15, 2  ;;  %p687_p7 = por %p686_p6, %p685_p5 }
 0x129   :  { %v166_v18 = vadd.f32 %v165_v17, %v164_v15  ;;  %p688_p8 = pnand %p687_p7, %p681_p4 }
 0x12b   :  { %v167_v19 = vrot.slane %v166_v18, 1 }
 0x12d   :  { %v168_v20 = vadd.f32 %v167_v19, %v166_v18  ;;  %v487_v19 = vld [vmem:[%s881_s8] ss:$0 sm:$0xff] }
 0x12f   :  { %v170_v21 = vmul.f32 0.125, %v168_v20 }
 0x131   :  { %v171_v22 = vsub.f32 %v157_v11, %v170_v21 }
 0x133   :  { %v172_v23 = vmul.f32 %v171_v22, %v171_v22 }
 0x135   :  { %v173_v24 = vrot.slane %v172_v23, 4 }
 0x137   :  { %v174_v25 = vadd.f32 %v173_v24, %v172_v23 }
 0x139   :  { %v175_v26 = vrot.slane %v174_v25, 2 }
 0x13b   :  { %v176_v27 = vadd.f32 %v175_v26, %v174_v25 }
 0x13d   :  { %v177_v28 = vrot.slane %v176_v27, 1 }
 0x13f   :  { %v178_v29 = vadd.f32 %v177_v28, %v176_v27 }
 0x141   :  { %v179_v30 = vmul.f32 0.125, %v178_v29 }
 0x143   :  { %v180_v31 = vadd.f32 1e-05, %v179_v30 }
 0x145   :  { %588 = vrsqrt.f32 %v180_v31 }
 0x14f   :  { %v589_v36 = vpop.eup %588 }
 0x150   :  { %v183_v37 = vmul.f32 %v589_v36, %v182_v34 }
 0x152   :  { %v187_v38 = vrot.slane %v183_v37, %v186_v35 }
 0x154   :  { %v188_v40 = vmul.f32 %v187_v38, %v171_v22 }
 0x156   :  { %v196_v41 = vadd.f32 %v477_v39, %v188_v40 }
 0x158   :  { %v197_v42 = vmax.f32 %v196_v41, 0.0 }
 0x15a   :  { %v198_v43 = vpack.c.bf16 %v197_v42, %v197_v42 }
 0x15c   :  { %539 = vmatmul.mubr.bf16.vlgmr.msra.gmra.mrb[0].mxu1 %v198_v43 }
 0x22f   :  { %v297_v52 = vpop.f32.mrb[0].mxu1 }
 0x230   :  { %v303_v53 = vrot.slane %v297_v52, 4  ;;  %v540_v54 = vpop.f32.mrb[1].mxu1 }
 0x231   :  { %v300_v55 = vpop.f32.mrb[2].mxu1 }
 0x232   :  { %v304_v56 = vadd.f32 %v303_v53, %v297_v52  ;;  %v541_v57 = vpop.f32.mrb[3].mxu1 }
 0x234   :  { %v305_v58 = vrot.slane %v304_v56, 2 }
 0x236   :  { %v306_v59 = vadd.f32 %v305_v58, %v304_v56 }
 0x238   :  { %v307_v60 = vrot.slane %v306_v59, 1 }
 0x23a   :  { %v308_v61 = vadd.f32 %v307_v60, %v306_v59 }
 0x23c   :  { %v309_v62 = vmul.f32 0.125, %v308_v61 }
 0x23e   :  { %v310_v63 = vsub.f32 %v297_v52, %v309_v62 }
 0x240   :  { %v311_v1 = vmul.f32 %v310_v63, %v310_v63 }
 0x242   :  { %v312_v2 = vrot.slane %v311_v1, 4 }
 0x244   :  { %v313_v3 = vadd.f32 %v312_v2, %v311_v1 }
 0x246   :  { %v314_v4 = vrot.slane %v313_v3, 2 }
 0x248   :  { %v315_v5 = vadd.f32 %v314_v4, %v313_v3 }
 0x24a   :  { %v316_v6 = vrot.slane %v315_v5, 1 }
 0x24c   :  { %v317_v0 = vadd.f32 %v316_v6, %v315_v5 }
 0x24e   :  { %v318_v7 = vmul.f32 0.125, %v317_v0 }
 0x250   :  { %v319_v8 = vadd.f32 1e-05, %v318_v7 }
 0x252   :  { %590 = vrsqrt.f32 %v319_v8 }
 0x25c   :  { %v591_v10 = vpop.eup %590 }
 0x25d   :  { %v322_v11 = vmul.f32 %v591_v10, %v321_v9 }
 0x25f   :  { %v326_v12 = vrot.slane %v322_v11, %v186_v35 }
 0x261   :  { %v327_v14 = vmul.f32 %v326_v12, %v310_v63 }
 0x263   :  { %v335_v15 = vadd.f32 %v486_v13, %v327_v14 }
 0x265   :  { %v336_v16 = vmax.f32 %v335_v15, 0.0 }
 0x267   :  { %v337_v17 = vpack.c.bf16 %v336_v16, %v336_v16 }
 0x269   :  { %338 = vst [vmem:[#allocation2] sm:$0xf] %v337_v17 }
 0x270   :  { %v339_v18 = vld [vmem:[#allocation2] sm:$0xf] }
 0x271   :  { %559 = vmatmul.mubr.bf16.vlgmr.msra.gmra.mrb[4].mxu0 %v339_v18 }
 0x344   :  { %v445_v20 = vpop.f32.mrb[4].mxu0 }
 0x345   :  { %v446_v21 = vadd.f32 %v487_v19, %v445_v20  ;;  %v560_v22 = vpop.f32.mrb[5].mxu0 }
 0x346   :  { %v448_v23 = vpop.f32.mrb[6].mxu0 }
 0x347   :  { %451 = vst [vmem:[#allocation11] sm:$0xff] %v446_v21  ;;  %v561_v24 = vpop.f32.mrb[7].mxu0 }
 0x348   :  { %691 = shalt.err (!%p688_p8)
}
 0x349   :  { %s692_s8 = scalar_lea.hbm %s882_s9, 128 }
 0x34a   :  { %p693_p9 = scmp.ne.s32.totalorder %s882_s9, %s692_s8  ;;  %p696_p10 = scmp.lt.u32.totalorder %s692_s8, %s882_s9 }
 0x34c   :  { %p698_p11 = pnand %p696_p10, %p693_p9 }
 0x34e   :  { %701 = shalt.err (!%p698_p11)
}
 0x34f   :  { %464 = dma.vmem_to_hbm [thread:$0]  %s462_s5, 128, %s882_s9, [#allocation5]  }
 0x350   :  { %708 = dma.done.wait [#allocation5], 128  }
 0x351   :  { %709 = vsyncadd [#allocation5], 4294967168 }
 0x352   :  { %468 = vsyncpa [#allocation4], 1 }
 0x353   :  { %469 = vsyncpa [#allocation7], 1 }
 0x354   :  { %470 = vsyncpa [#allocation10], 1 }
 0x355   :  { %471 = vsyncpa [#allocation5], 1 }

// kernel: tpu_custom_call.1
= control target key start
LH: loop header
LB: loop body
LE: loop exit
PB: predicated region body
PF: predicated region fallthrough
CT: control target
= control target key end

     0   :  { %14 = vsyncpa [#allocation4], 0  ;;  %s873_s0 = inlined_call_operand.hbm [shape: bf16[8,16], index: 0, kind: input, shape index: {}]   ;;  %s874_s1 = inlined_call_operand.hbm [shape: bf16[16,128], index: 1, kind: input, shape index: {}]   ;;  %s875_s2 = inlined_call_operand.vmem [shape: f32[1,128], index: 2, kind: input, shape index: {}]   ;;  %s876_s3 = inlined_call_operand.vmem [shape: f32[1,128], index: 3, kind: input, shape index: {}]   ;;  %s877_s4 = inlined_call_operand.hbm [shape: bf16[128,128], index: 4, kind: input, shape index: {}]   ;;  %s878_s5 = inlined_call_operand.vmem [shape: f32[1,128], index: 5, kind: input, shape index: {}]   ;;  %s879_s6 = inlined_call_operand.vmem [shape: f32[1,128], index: 6, kind: input, shape index: {}]   ;;  %s880_s7 = inlined_call_operand.hbm [shape: bf16[128,128], index: 7, kind: input, shape index: {}]   ;;  %s881_s8 = inlined_call_operand.vmem [shape: f32[1,128], index: 8, kind: input, shape index: {}]   ;;  %s882_s9 = inlined_call_operand.hbm [shape: f32[8,128], index: 9, kind: output, shape index: {}]  }
   0x1   :  { %15 = vsyncpa [#allocation7], 0 }
   0x2   :  { %16 = vsyncpa [#allocation10], 0 }
   0x3   :  { %17 = vsyncpa [#allocation5], 0  ;;  %s710_s30 = smov [#allocation6]   ;;  %s592_s13 = scalar_lea.hbm %s874_s1, 128 }
   0x4   :  { %s33_s10 = sshll.u32 %s710_s30, 4  ;;  %p593_p0 = scmp.ne.s32.totalorder %s874_s1, %s592_s13  ;;  %s34_s10 = int_to_ptr.vmem [resolvable:$true] %s33_s10 }
   0x5   :  { %p596_p1 = scmp.lt.u32.totalorder %s592_s13, %s874_s1 }
   0x7   :  { %p598_p2 = pnand %p596_p1, %p593_p0 }
   0x9   :  { %601 = shalt.err (!%p598_p2)
}
   0xa   :  { %s602_s18 = scalar_lea.vmem %s34_s10, 128  ;;  %p607_p4 = scmp.lt.s32.totalorder %s34_s10, %s34_s10 }
   0xb   :  { %p603_p3 = scmp.ne.s32.totalorder %s34_s10, %s602_s18  ;;  %p608_p5 = scmp.lt.s32.totalorder %s602_s18, %s602_s18 }
   0xd   :  { %p609_p6 = por %p608_p5, %p607_p4 }
   0xf   :  { %p610_p7 = pnand %p609_p6, %p603_p3 }
  0x11   :  { %613 = shalt.err (!%p610_p7)
}
  0x12   :  { %s711_s19 = smov 64   ;;  %s712_s20 = smov 4  }
  0x13   :  { %39 = dma.hbm_to_vmem [thread:$0]  %s874_s1, 128, %s34_s10, [#allocation7], %s711_s19, %s711_s19, %s712_s20  }
  0x14   :  { %s713_s23 = smov [#allocation3]   ;;  %s714_s25 = smov [#allocation8]  }
  0x15   :  { %s24_s24 = sshll.u32 %s713_s23, 4  ;;  %s49_s26 = sshll.u32 %s714_s25, 4  ;;  %s25_s24 = int_to_ptr.vmem [resolvable:$true] %s24_s24  ;;  %s50_s26 = int_to_ptr.vmem [resolvable:$true] %s49_s26 }
  0x16   :  { %s614_s29 = scalar_lea.hbm %s873_s0, 64 }
  0x17   :  { %p615_p8 = scmp.ne.s32.totalorder %s873_s0, %s614_s29  ;;  %p618_p9 = scmp.lt.u32.totalorder %s614_s29, %s873_s0 }
  0x19   :  { %p620_p10 = pnand %p618_p9, %p615_p8 }
  0x1b   :  { %623 = shalt.err (!%p620_p10)
}
  0x1c   :  { %s624_s1 = scalar_lea.vmem %s25_s24, 64  ;;  %p629_p12 = scmp.lt.s32.totalorder %s25_s24, %s25_s24 }
  0x1d   :  { %p625_p11 = scmp.ne.s32.totalorder %s25_s24, %s624_s1  ;;  %p630_p13 = scmp.lt.s32.totalorder %s624_s1, %s624_s1 }
  0x1f   :  { %p631_p0 = por %p630_p13, %p629_p12 }
  0x21   :  { %p632_p1 = pnand %p631_p0, %p625_p11 }
  0x23   :  { %635 = shalt.err (!%p632_p1)
}
  0x24   :  { %27 = dma.hbm_to_vmem [thread:$0]  %s873_s0, 64, %s25_s24, [#allocation4]  }
  0x25   :  { %s636_s17 = scalar_lea.hbm %s877_s4, 1024 }
  0x26   :  { %p637_p2 = scmp.ne.s32.totalorder %s877_s4, %s636_s17  ;;  %p640_p3 = scmp.lt.u32.totalorder %s636_s17, %s877_s4 }
  0x28   :  { %p642_p4 = pnand %p640_p3, %p637_p2 }
  0x2a   :  { %645 = shalt.err (!%p642_p4)
}
  0x2b   :  { %s646_s25 = scalar_lea.vmem %s50_s26, 1024  ;;  %p651_p6 = scmp.lt.s32.totalorder %s50_s26, %s50_s26 }
  0x2c   :  { %p647_p5 = scmp.ne.s32.totalorder %s50_s26, %s646_s25  ;;  %p652_p7 = scmp.lt.s32.totalorder %s646_s25, %s646_s25 }
  0x2e   :  { %p653_p8 = por %p652_p7, %p651_p6 }
  0x30   :  { %p654_p9 = pnand %p653_p8, %p647_p5 }
  0x32   :  { %657 = shalt.err (!%p654_p9)
}
  0x33   :  { %55 = dma.hbm_to_vmem [thread:$0]  %s877_s4, 1024, %s50_s26, [#allocation7], %s711_s19, %s711_s19, %s712_s20  }
  0x34   :  { %s715_s27 = smov [#allocation9]   ;;  %s658_s11 = scalar_lea.hbm %s880_s7, 1024 }
  0x35   :  { %s68_s28 = sshll.u32 %s715_s27, 4  ;;  %p659_p10 = scmp.ne.s32.totalorder %s880_s7, %s658_s11  ;;  %s69_s28 = int_to_ptr.vmem [resolvable:$true] %s68_s28 }
  0x36   :  { %p662_p11 = scmp.lt.u32.totalorder %s658_s11, %s880_s7 }
  0x38   :  { %p664_p12 = pnand %p662_p11, %p659_p10 }
  0x3a   :  { %667 = shalt.err (!%p664_p12)
}
  0x3b   :  { %s668_s14 = scalar_lea.vmem %s69_s28, 1024  ;;  %p673_p0 = scmp.lt.s32.totalorder %s69_s28, %s69_s28 }
  0x3c   :  { %p669_p13 = scmp.ne.s32.totalorder %s69_s28, %s668_s14  ;;  %p674_p1 = scmp.lt.s32.totalorder %s668_s14, %s668_s14 }
  0x3e   :  { %p675_p2 = por %p674_p1, %p673_p0 }
  0x40   :  { %p676_p3 = pnand %p675_p2, %p669_p13 }
  0x42   :  { %679 = shalt.err (!%p676_p3)
}
  0x43   :  { %74 = dma.hbm_to_vmem [thread:$0]  %s880_s7, 1024, %s69_s28, [#allocation10], %s711_s19, %s711_s19, %s712_s20  }
  0x44   :  { %702 = dma.done.wait [#allocation4], 64  }
  0x45   :  { %703 = vsyncadd [#allocation4], 4294967232 }
  0x46   :  { %704 = dma.done.wait [#allocation7], 1152  }
  0x47   :  { %705 = vsyncadd [#allocation7], 4294966144 }
  0x48   :  { %706 = dma.done.wait [#allocation10], 1024  }
  0x49   :  { %707 = vsyncadd [#allocation10], 4294966272  ;;  %v716_v0 = vmov 0.0   ;;  %vm717_vm0 = vmmov 0   ;;  %v571_v1 = vld [vmem:[#allocation6] sm:$0xff]   ;;  %vm119_vm1 = vcmask 130048   ;;  %v184_v32 = vlaneseq }
  0x4a   :  { %516 = vmatprep.subr.bf16.mxu0 %v716_v0  ;;  %518 = vmatprep.mubr.msk.bf16.mxu0 %vm717_vm0, %v716_v0  ;;  %v110_v2 = vld [vmem:[#allocation3] sm:$0xf]  ;;  %v572_v3 = vld [vmem:[#allocation8] sm:$0xff]   ;;  %v573_v4 = vld [vmem:[#allocation8 + $0x8] sm:$0xff]   ;;  %s718_s22 = smov [#allocation11]  }
  0x4b   :  { %522 = vmatprep.subr.bf16.mxu1 %v716_v0  ;;  %538 = vmatprep.mubr.msk.bf16.mxu1 %vm717_vm0, %v716_v0  ;;  %v574_v5 = vld [vmem:[#allocation8 + $0x10] sm:$0xff]   ;;  %v575_v6 = vld [vmem:[#allocation8 + $0x18] sm:$0xff]   ;;  %v576_v7 = vld [vmem:[#allocation8 + $0x20] sm:$0xff]   ;;  %v185_v33 = vshrl.u32 %v184_v32, 7 }
  0x4c   :  { %517 = vmatpush3.bf16.msra.mxu0 %v571_v1  ;;  %523 = vmatpush3.bf16.msra.mxu1 %v572_v3  ;;  %v577_v8 = vld [vmem:[#allocation8 + $0x28] sm:$0xff]   ;;  %v578_v9 = vld [vmem:[#allocation8 + $0x30] sm:$0xff]   ;;  %v579_v10 = vld [vmem:[#allocation8 + $0x38] sm:$0xff]  }
  0x4d   :  { %542 = vmatprep.subr.bf16.mxu0 %v716_v0  ;;  %524 = vmatprep.subr.bf16.mxu1 %v716_v0  ;;  %v182_v34 = vld [vmem:[%s875_s2] sm:$0x1]  ;;  %v186_v35 = vsub.s32 0, %v185_v33  ;;  %v580_v44 = vld [vmem:[#allocation9] sm:$0xff]   ;;  %v581_v45 = vld [vmem:[#allocation9 + $0x8] sm:$0xff]  }
  0x4e   :  { %v477_v39 = vld [vmem:[%s876_s3] ss:$0 sm:$0xff]  ;;  %v583_v47 = vld [vmem:[#allocation9 + $0x18] sm:$0xff]   ;;  %v584_v48 = vld [vmem:[#allocation9 + $0x20] sm:$0xff]  }
  0x4f   :  { %519 = vmatmul.mubr.msk.bf16.vlgmr.msra.gmra.mrb[0].mxu0 %vm119_vm1, %v110_v2  ;;  %v582_v46 = vld [vmem:[#allocation9 + $0x10] sm:$0xff]   ;;  %v585_v49 = vld [vmem:[#allocation9 + $0x28] sm:$0xff]   ;;  %v587_v51 = vld [vmem:[#allocation9 + $0x38] sm:$0xff]  }
  0x50   :  { %558 = vmatprep.mubr.msk.bf16.mxu0 %vm717_vm0, %v716_v0  ;;  %525 = vmatpush3.bf16.msra.mxu1 %v573_v4  ;;  %v586_v50 = vld [vmem:[#allocation9 + $0x30] sm:$0xff]  }
  0x51   :  { %526 = vmatprep.subr.bf16.mxu1 %v716_v0  ;;  %543 = vmatpush3.bf16.msra.mxu0 %v580_v44 }
  0x52   :  { %544 = vmatprep.subr.bf16.mxu0 %v716_v0 }
  0x54   :  { %527 = vmatpush3.bf16.msra.mxu1 %v574_v5 }
  0x55   :  { %528 = vmatprep.subr.bf16.mxu1 %v716_v0  ;;  %545 = vmatpush3.bf16.msra.mxu0 %v581_v45 }
  0x56   :  { %546 = vmatprep.subr.bf16.mxu0 %v716_v0 }
  0x58   :  { %529 = vmatpush3.bf16.msra.mxu1 %v575_v6 }
  0x59   :  { %530 = vmatprep.subr.bf16.mxu1 %v716_v0  ;;  %547 = vmatpush3.bf16.msra.mxu0 %v582_v46 }
  0x5a   :  { %548 = vmatprep.subr.bf16.mxu0 %v716_v0 }
  0x5c   :  { %531 = vmatpush3.bf16.msra.mxu1 %v576_v7 }
  0x5d   :  { %532 = vmatprep.subr.bf16.mxu1 %v716_v0  ;;  %549 = vmatpush3.bf16.msra.mxu0 %v583_v47 }
  0x5e   :  { %550 = vmatprep.subr.bf16.mxu0 %v716_v0 }
  0x60   :  { %533 = vmatpush3.bf16.msra.mxu1 %v577_v8 }
  0x61   :  { %534 = vmatprep.subr.bf16.mxu1 %v716_v0  ;;  %551 = vmatpush3.bf16.msra.mxu0 %v584_v48 }
  0x62   :  { %552 = vmatprep.subr.bf16.mxu0 %v716_v0 }
  0x64   :  { %535 = vmatpush3.bf16.msra.mxu1 %v578_v9  ;;  %v321_v9 = vld [vmem:[%s878_s5] sm:$0x1]  ;;  %s461_s5 = sshll.u32 %s718_s22, 4  ;;  %s462_s5 = int_to_ptr.vmem [resolvable:$true] %s461_s5 }
  0x65   :  { %536 = vmatprep.subr.bf16.mxu1 %v716_v0  ;;  %553 = vmatpush3.bf16.msra.mxu0 %v585_v49  ;;  %p685_p5 = scmp.lt.s32.totalorder %s462_s5, %s462_s5 }
  0x66   :  { %554 = vmatprep.subr.bf16.mxu0 %v716_v0 }
  0x68   :  { %537 = vmatpush3.bf16.msra.mxu1 %v579_v10 }
  0x69   :  { %555 = vmatpush3.bf16.msra.mxu0 %v586_v50 }
  0x6a   :  { %556 = vmatprep.subr.bf16.mxu0 %v716_v0 }
  0x6d   :  { %557 = vmatpush3.bf16.msra.mxu0 %v587_v51 }
 0x122   :  { %v157_v11 = vpop.f32.mrb[0].mxu0 }
 0x123   :  { %v163_v12 = vrot.slane %v157_v11, 4  ;;  %v520_v13 = vpop.f32.mrb[1].mxu0 }
 0x124   :  { %v160_v14 = vpop.f32.mrb[2].mxu0  ;;  %v486_v13 = vld [vmem:[%s879_s6] ss:$0 sm:$0xff]  ;;  %s680_s6 = scalar_lea.vmem %s462_s5, 128 }
 0x125   :  { %v164_v15 = vadd.f32 %v163_v12, %v157_v11  ;;  %v521_v16 = vpop.f32.mrb[3].mxu0  ;;  %p681_p4 = scmp.ne.s32.totalorder %s462_s5, %s680_s6  ;;  %p686_p6 = scmp.lt.s32.totalorder %s680_s6, %s680_s6 }
 0x127   :  { %v165_v17 = vrot.slane %v164_v15, 2  ;;  %p687_p7 = por %p686_p6, %p685_p5 }
 0x129   :  { %v166_v18 = vadd.f32 %v165_v17, %v164_v15  ;;  %p688_p8 = pnand %p687_p7, %p681_p4 }
 0x12b   :  { %v167_v19 = vrot.slane %v166_v18, 1 }
 0x12d   :  { %v168_v20 = vadd.f32 %v167_v19, %v166_v18  ;;  %v487_v19 = vld [vmem:[%s881_s8] ss:$0 sm:$0xff] }
 0x12f   :  { %v170_v21 = vmul.f32 0.125, %v168_v20 }
 0x131   :  { %v171_v22 = vsub.f32 %v157_v11, %v170_v21 }
 0x133   :  { %v172_v23 = vmul.f32 %v171_v22, %v171_v22 }
 0x135   :  { %v173_v24 = vrot.slane %v172_v23, 4 }
 0x137   :  { %v174_v25 = vadd.f32 %v173_v24, %v172_v23 }
 0x139   :  { %v175_v26 = vrot.slane %v174_v25, 2 }
 0x13b   :  { %v176_v27 = vadd.f32 %v175_v26, %v174_v25 }
 0x13d   :  { %v177_v28 = vrot.slane %v176_v27, 1 }
 0x13f   :  { %v178_v29 = vadd.f32 %v177_v28, %v176_v27 }
 0x141   :  { %v179_v30 = vmul.f32 0.125, %v178_v29 }
 0x143   :  { %v180_v31 = vadd.f32 1e-05, %v179_v30 }
 0x145   :  { %588 = vrsqrt.f32 %v180_v31 }
 0x14f   :  { %v589_v36 = vpop.eup %588 }
 0x150   :  { %v183_v37 = vmul.f32 %v589_v36, %v182_v34 }
 0x152   :  { %v187_v38 = vrot.slane %v183_v37, %v186_v35 }
 0x154   :  { %v188_v40 = vmul.f32 %v187_v38, %v171_v22 }
 0x156   :  { %v196_v41 = vadd.f32 %v477_v39, %v188_v40 }
 0x158   :  { %v197_v42 = vmax.f32 %v196_v41, 0.0 }
 0x15a   :  { %v198_v43 = vpack.c.bf16 %v197_v42, %v197_v42 }
 0x15c   :  { %539 = vmatmul.mubr.bf16.vlgmr.msra.gmra.mrb[0].mxu1 %v198_v43 }
 0x22f   :  { %v297_v52 = vpop.f32.mrb[0].mxu1 }
 0x230   :  { %v303_v53 = vrot.slane %v297_v52, 4  ;;  %v540_v54 = vpop.f32.mrb[1].mxu1 }
 0x231   :  { %v300_v55 = vpop.f32.mrb[2].mxu1 }
 0x232   :  { %v304_v56 = vadd.f32 %v303_v53, %v297_v52  ;;  %v541_v57 = vpop.f32.mrb[3].mxu1 }
 0x234   :  { %v305_v58 = vrot.slane %v304_v56, 2 }
 0x236   :  { %v306_v59 = vadd.f32 %v305_v58, %v304_v56 }
 0x238   :  { %v307_v60 = vrot.slane %v306_v59, 1 }
 0x23a   :  { %v308_v61 = vadd.f32 %v307_v60, %v306_v59 }
 0x23c   :  { %v309_v62 = vmul.f32 0.125, %v308_v61 }
 0x23e   :  { %v310_v63 = vsub.f32 %v297_v52, %v309_v62 }
 0x240   :  { %v311_v1 = vmul.f32 %v310_v63, %v310_v63 }
 0x242   :  { %v312_v2 = vrot.slane %v311_v1, 4 }
 0x244   :  { %v313_v3 = vadd.f32 %v312_v2, %v311_v1 }
 0x246   :  { %v314_v4 = vrot.slane %v313_v3, 2 }
 0x248   :  { %v315_v5 = vadd.f32 %v314_v4, %v313_v3 }
 0x24a   :  { %v316_v6 = vrot.slane %v315_v5, 1 }
 0x24c   :  { %v317_v0 = vadd.f32 %v316_v6, %v315_v5 }
 0x24e   :  { %v318_v7 = vmul.f32 0.125, %v317_v0 }
 0x250   :  { %v319_v8 = vadd.f32 1e-05, %v318_v7 }
 0x252   :  { %590 = vrsqrt.f32 %v319_v8 }
 0x25c   :  { %v591_v10 = vpop.eup %590 }
 0x25d   :  { %v322_v11 = vmul.f32 %v591_v10, %v321_v9 }
 0x25f   :  { %v326_v12 = vrot.slane %v322_v11, %v186_v35 }
 0x261   :  { %v327_v14 = vmul.f32 %v326_v12, %v310_v63 }
 0x263   :  { %v335_v15 = vadd.f32 %v486_v13, %v327_v14 }
 0x265   :  { %v336_v16 = vmax.f32 %v335_v15, 0.0 }
 0x267   :  { %v337_v17 = vpack.c.bf16 %v336_v16, %v336_v16 }
 0x269   :  { %338 = vst [vmem:[#allocation2] sm:$0xf] %v337_v17 }
 0x270   :  { %v339_v18 = vld [vmem:[#allocation2] sm:$0xf] }
 0x271   :  { %559 = vmatmul.mubr.bf16.vlgmr.msra.gmra.mrb[4].mxu0 %v339_v18 }
 0x344   :  { %v445_v20 = vpop.f32.mrb[4].mxu0 }
 0x345   :  { %v446_v21 = vadd.f32 %v487_v19, %v445_v20  ;;  %v560_v22 = vpop.f32.mrb[5].mxu0 }
 0x346   :  { %v448_v23 = vpop.f32.mrb[6].mxu0 }
 0x347   :  { %451 = vst [vmem:[#allocation11] sm:$0xff] %v446_v21  ;;  %v561_v24 = vpop.f32.mrb[7].mxu0 }
 0x348   :  { %691 = shalt.err (!%p688_p8)
}
 0x349   :  { %s692_s8 = scalar_lea.hbm %s882_s9, 128 }
 0x34a   :  { %p693_p9 = scmp.ne.s32.totalorder %s882_s9, %s692_s8  ;;  %p696_p10 = scmp.lt.u32.totalorder %s692_s8, %s882_s9 }
 0x34c   :  { %p698_p11 = pnand %p696_p10, %p693_p9 }
 0x34e   :  { %701 = shalt.err (!%p698_p11)
}
 0x34f   :  { %464 = dma.vmem_to_hbm [thread:$0]  %s462_s5, 128, %s882_s9, [#allocation5]  }
 0x350   :  { %708 = dma.done.wait [#allocation5], 128  }
 0x351   :  { %709 = vsyncadd [#allocation5], 4294967168 }
 0x352   :  { %468 = vsyncpa [#allocation4], 1 }
 0x353   :  { %469 = vsyncpa [#allocation7], 1 }
 0x354   :  { %470 = vsyncpa [#allocation10], 1 }
 0x355   :  { %471 = vsyncpa [#allocation5], 1 }

</bundles_post_ra>
